<compile_context>
chip_gen: v6e
topology: v6e:2x2x1
jax: 0.10.0
libtpu: 0.0.40
codegen_flags: <defaults>
</compile_context>

<pallas_src>
import functools

import jax
import jax.numpy as jnp
import numpy as np
from jax.experimental import pallas as pl
from jax.experimental.pallas import tpu as pltpu

BN_EPS = 1e-5
OUT_H, OUT_W = 19, 19
LANE = 128


# ----------------------------------------------------------------------------
# Bilinear (align_corners=False) coefficients / operators, PyTorch convention.
# ----------------------------------------------------------------------------
def _interp_coeffs(in_size, out_size):
    scale = in_size / out_size
    dst = np.arange(out_size, dtype=np.float64)
    src = np.clip((dst + 0.5) * scale - 0.5, 0.0, None)
    i0 = np.floor(src).astype(np.int64)
    i1 = np.minimum(i0 + 1, in_size - 1)
    w1 = src - i0
    w0 = 1.0 - w1
    return i0, i1, w0, w1


def _interp_matrix(in_size, out_size):
    i0, i1, w0, w1 = _interp_coeffs(in_size, out_size)
    a = np.zeros((out_size, in_size), dtype=np.float64)
    r = np.arange(out_size)
    np.add.at(a, (r, i0), w0)
    np.add.at(a, (r, i1), w1)
    return a  # (out, in)


def _bilinear_operator(h, w, oh, ow, padded_cols):
    """(h*w, padded_cols) f32 operator; columns >= oh*ow are exactly zero."""
    ah = _interp_matrix(h, oh)   # (oh, h)
    aw = _interp_matrix(w, ow)   # (ow, w)
    # M[p*w + q, i*ow + j] = ah[i, p] * aw[j, q]
    m = np.kron(ah.T, aw.T)      # (h*w, oh*ow)
    out = np.zeros((h * w, padded_cols), dtype=np.float32)
    out[:, :oh * ow] = m.astype(np.float32)
    return out


# ----------------------------------------------------------------------------
# Pallas kernel
# ----------------------------------------------------------------------------
def _mask_branch_kernel(x_ref, p_ref, wblk_ref, m_ref, o_ref, *, n, c):
    x = x_ref[...]                 # (n*c, h*w) f32, lane-dense
    gamma = p_ref[:, 0:1]          # (n*c, 1)  (pre-tiled per row in the wrapper)
    beta = p_ref[:, 1:2]           # (n*c, 1)
    bias = p_ref[:, 2:3]           # (n*c, 1)  conv bias per output row
    w_blk = wblk_ref[...]          # (n*c, n*c) block-diagonal conv weights
    nc, hw = x.shape
    inv_cnt = 1.0 / (n * hw)       # 1 / (N * H * W)

    def batch_combine(v):
        # v: (n*c, 1) per-row sums.  Returns per-channel batch totals replicated to
        # every row, using sublane rotations on the XLU (no slices, no concats).
        if n == 1:
            return v
        if (n & (n - 1)) == 0:                       # power-of-two batch: log2(n) rolls
            total = v
            shift = c
            while shift < nc:
                total = total + pltpu.roll(total, shift=shift, axis=0)
                shift *= 2
            return total
        total = v                                    # general n: n-1 rolls
        for k in range(1, n):
            total = total + pltpu.roll(v, shift=k * c, axis=0)
        return total

    def bn_relu(h):
        # Training-mode BatchNorm2d (biased variance), numerically-stable two-pass form.
        mean = batch_combine(jnp.sum(h, axis=1, keepdims=True)) * inv_cnt      # (n*c,1)
        centered = h - mean
        var = batch_combine(
            jnp.sum(centered * centered, axis=1, keepdims=True)) * inv_cnt     # (n*c,1)
        scale = gamma * jax.lax.rsqrt(var + BN_EPS)                            # (n*c,1)
        # BN(x) = (x - mean) * scale + beta, fused with ReLU.
        return jnp.maximum(centered * scale + beta, 0.0)

    def conv1x1(h):
        # 1x1 conv as ONE block-diagonal MXU matmul: (n*c, n*c) @ (n*c, h*w) + bias col.
        return jnp.dot(w_blk, h, preferred_element_type=jnp.float32) + bias

    h = x
    for _ in range(3):
        h = conv1x1(bn_relu(h))
    h = h + x                                         # residual skip

    # Bilinear resize to (19, 19): single MXU matmul with the precomputed separable
    # operator, zero-padded to 384 lanes so the output store is an unmasked, lane-dense
    # (n*c, 384) slab.
    o_ref[...] = jnp.dot(h, m_ref[...], preferred_element_type=jnp.float32)


# ----------------------------------------------------------------------------
# Wrapper
# ----------------------------------------------------------------------------
def mask_branch(x_nchw, gamma, beta, conv_w, conv_b):
    n, c, h, w = x_nchw.shape
    oh, ow = OUT_H, OUT_W
    hw = h * w
    nc = n * c
    out_cols = ((oh * ow + LANE - 1) // LANE) * LANE   # 361 -> 384 (lane-dense)

    # Free reshape (no transpose): NCHW -> (N*C, H*W), spatial on the 128-lane axis.
    x_rows = x_nchw.reshape(nc, hw).astype(jnp.float32)

    # Per-row parameters: gamma, beta, conv bias, pre-tiled to N*C rows.
    params = jnp.stack(
        [jnp.tile(gamma.astype(jnp.float32), n),
         jnp.tile(beta.astype(jnp.float32), n),
         jnp.tile(conv_b.reshape(-1).astype(jnp.float32), n)],
        axis=1)                                                      # (n*c, 3)

    # Block-diagonal conv operator for the MXU: kron(eye(N), W).
    w_blk = jnp.kron(jnp.eye(n, dtype=jnp.float32),
                     conv_w.reshape(c, c).astype(jnp.float32))       # (n*c, n*c)

    # Precomputed separable bilinear operator, zero-padded to 384 columns (f32 only:
    # bf16 would lose ~3e-3 relative precision on the interpolation weights).
    m = jnp.asarray(_bilinear_operator(h, w, oh, ow, out_cols))      # (h*w, 384)

    kernel = functools.partial(_mask_branch_kernel, n=n, c=c)

    bn_flops = 3 * (8 * nc * hw)
    conv_flops = 3 * (2 * nc * nc * hw + nc * hw)
    resize_flops = 2 * nc * hw * out_cols
    flops = bn_flops + conv_flops + resize_flops
    bytes_accessed = 4 * (x_rows.size + params.size + w_blk.size + m.size + nc * out_cols)

    out_flat = pl.pallas_call(
        kernel,
        out_shape=jax.ShapeDtypeStruct((nc, out_cols), jnp.float32),
        in_specs=[
            pl.BlockSpec(memory_space=pltpu.MemorySpace.VMEM),   # x rows
            pl.BlockSpec(memory_space=pltpu.MemorySpace.VMEM),   # gamma/beta/bias rows
            pl.BlockSpec(memory_space=pltpu.MemorySpace.VMEM),   # block-diag conv weights
            pl.BlockSpec(memory_space=pltpu.MemorySpace.VMEM),   # bilinear operator
        ],
        out_specs=pl.BlockSpec(memory_space=pltpu.MemorySpace.VMEM),
        cost_estimate=pl.CostEstimate(
            flops=int(flops), transcendentals=3 * nc, bytes_accessed=int(bytes_accessed)),
    )(x_rows, params, w_blk, m)

    # Drop the zero-padded lanes, then free reshape back to NCHW.
    return out_flat[:, :oh * ow].reshape(n, c, oh, ow)


# ----------------------------------------------------------------------------
# Pure-JAX reference mirroring the PyTorch module (training-mode BN,
# F.interpolate bilinear align_corners=False via gather + lerp).
# ----------------------------------------------------------------------------
def mask_branch_ref(x, gamma, beta, conv_w, conv_b):
    n, c, h, w = x.shape
    g = gamma.reshape(1, c, 1, 1)
    bt = beta.reshape(1, c, 1, 1)
    wm = conv_w.reshape(c, c)
    cb = conv_b.reshape(1, c, 1, 1)

    def bn_relu_conv(t):
        mean = jnp.mean(t, axis=(0, 2, 3), keepdims=True)
        var = jnp.mean((t - mean) ** 2, axis=(0, 2, 3), keepdims=True)
        tn = (t - mean) / jnp.sqrt(var + BN_EPS) * g + bt
        tn = jnp.maximum(tn, 0.0)
        return jnp.einsum("nihw,oi->nohw", tn, wm,
                          precision=jax.lax.Precision.HIGHEST) + cb

    y = x
    t = x
    for _ in range(3):
        t = bn_relu_conv(t)
    t = t + y

    i0, i1, h0, h1 = _interp_coeffs(h, OUT_H)
    j0, j1, v0, v1 = _interp_coeffs(w, OUT_W)
    h0 = jnp.asarray(h0, jnp.float32)[None, None, :, None]
    h1 = jnp.asarray(h1, jnp.float32)[None, None, :, None]
    v0 = jnp.asarray(v0, jnp.float32)[None, None, None, :]
    v1 = jnp.asarray(v1, jnp.float32)[None, None, None, :]
    rows = t[:, :, i0, :] * h0 + t[:, :, i1, :] * h1
    return rows[:, :, :, j0] * v0 + rows[:, :, :, j1] * v1


if __name__ == "__main__":
    key = jax.random.PRNGKey(0)
    k_x, k_g, k_b, k_w, k_cb = jax.random.split(key, 5)

    N, C, H, W = 2, 4, 16, 16
    x = jax.random.normal(k_x, (N, C, H, W), dtype=jnp.float32)

    # Deterministic parameters (BatchNorm2d weight/bias; Conv2d 1x1 weight/bias).
    gamma = 1.0 + 0.1 * jax.random.normal(k_g, (C,), dtype=jnp.float32)
    beta = 0.1 * jax.random.normal(k_b, (C,), dtype=jnp.float32)
    conv_w = jax.random.normal(k_w, (C, C, 1, 1), dtype=jnp.float32) * (1.0 / np.sqrt(C))
    conv_b = 0.1 * jax.random.normal(k_cb, (C,), dtype=jnp.float32)

    out = jax.block_until_ready(mask_branch(x, gamma, beta, conv_w, conv_b))
    ref = jax.block_until_ready(mask_branch_ref(x, gamma, beta, conv_w, conv_b))

    assert out.shape == (N, C, OUT_H, OUT_W), out.shape
    np.testing.assert_allclose(np.asarray(out), np.asarray(ref), rtol=2e-4, atol=2e-4)

    print("KERNEL_OK")
</pallas_src>

<mosaic_0001>
module attributes {stable_mosaic.version = 11 : i64} {
  func.func @_mask_branch_kernel(%arg0: memref<8x256xf32, #tpu.memory_space<vmem>>, %arg1: memref<8x3xf32, #tpu.memory_space<vmem>>, %arg2: memref<8x8xf32, #tpu.memory_space<vmem>>, %arg3: memref<256x384xf32, #tpu.memory_space<vmem>>, %arg4: memref<8x384xf32, #tpu.memory_space<vmem>>) attributes {dimension_semantics = [], scalar_prefetch = 0 : i64, scratch_operands = 0 : i64, tpu.core_type = #tpu.core_type<tc>} {
    %c0 = arith.constant 0 : index
    %c0_0 = arith.constant 0 : index
    %0 = vector.load %arg0[%c0, %c0_0] : memref<8x256xf32, #tpu.memory_space<vmem>>, vector<8x256xf32>
    %c0_1 = arith.constant 0 : index
    %c0_2 = arith.constant 0 : index
    %1 = vector.load %arg1[%c0_1, %c0_2] : memref<8x3xf32, #tpu.memory_space<vmem>>, vector<8x1xf32>
    %c0_3 = arith.constant 0 : index
    %c1 = arith.constant 1 : index
    %2 = vector.load %arg1[%c0_3, %c1] : memref<8x3xf32, #tpu.memory_space<vmem>>, vector<8x1xf32>
    %c0_4 = arith.constant 0 : index
    %c2 = arith.constant 2 : index
    %3 = vector.load %arg1[%c0_4, %c2] : memref<8x3xf32, #tpu.memory_space<vmem>>, vector<8x1xf32>
    %c0_5 = arith.constant 0 : index
    %c0_6 = arith.constant 0 : index
    %4 = vector.load %arg2[%c0_5, %c0_6] : memref<8x8xf32, #tpu.memory_space<vmem>>, vector<8x8xf32>
    %cst = arith.constant dense<0.000000e+00> : vector<8xf32>
    %5 = vector.multi_reduction <add>, %0, %cst [1] : vector<8x256xf32> to vector<8xf32>
    %6 = vector.shape_cast %5 : vector<8xf32> to vector<8x1xf32>
    %c4_i32 = arith.constant 4 : i32
    %7 = tpu.dynamic_rotate %6 by %c4_i32 dim 0 : vector<8x1xf32>, i32 -> vector<8x1xf32>
    %8 = arith.addf %6, %7 : vector<8x1xf32>
    %cst_7 = arith.constant 0.001953125 : f32
    %9 = vector.broadcast %cst_7 : f32 to vector<8x1xf32>
    %10 = arith.mulf %8, %9 : vector<8x1xf32>
    %11 = vector.broadcast %10 : vector<8x1xf32> to vector<8x256xf32>
    %12 = arith.subf %0, %11 : vector<8x256xf32>
    %13 = arith.mulf %12, %12 : vector<8x256xf32>
    %cst_8 = arith.constant dense<0.000000e+00> : vector<8xf32>
    %14 = vector.multi_reduction <add>, %13, %cst_8 [1] : vector<8x256xf32> to vector<8xf32>
    %15 = vector.shape_cast %14 : vector<8xf32> to vector<8x1xf32>
    %c4_i32_9 = arith.constant 4 : i32
    %16 = tpu.dynamic_rotate %15 by %c4_i32_9 dim 0 : vector<8x1xf32>, i32 -> vector<8x1xf32>
    %17 = arith.addf %15, %16 : vector<8x1xf32>
    %cst_10 = arith.constant 0.001953125 : f32
    %18 = vector.broadcast %cst_10 : f32 to vector<8x1xf32>
    %19 = arith.mulf %17, %18 : vector<8x1xf32>
    %cst_11 = arith.constant 9.99999974E-6 : f32
    %20 = vector.broadcast %cst_11 : f32 to vector<8x1xf32>
    %21 = arith.addf %19, %20 : vector<8x1xf32>
    %22 = math.rsqrt %21 : vector<8x1xf32>
    %23 = arith.mulf %1, %22 : vector<8x1xf32>
    %24 = vector.broadcast %23 : vector<8x1xf32> to vector<8x256xf32>
    %25 = arith.mulf %12, %24 : vector<8x256xf32>
    %26 = vector.broadcast %2 : vector<8x1xf32> to vector<8x256xf32>
    %27 = arith.addf %25, %26 : vector<8x256xf32>
    %cst_12 = arith.constant 0.000000e+00 : f32
    %28 = vector.broadcast %cst_12 : f32 to vector<8x256xf32>
    %29 = arith.maximumf %27, %28 : vector<8x256xf32>
    %cst_13 = arith.constant dense<0.000000e+00> : vector<8x256xf32>
    %30 = tpu.matmul %4, %29, %cst_13 {dimension_numbers = #tpu.dot_dimension_numbers<[1], [0], [0], [1], [0, 0, 1, 1], [], []>} : vector<8x8xf32>, vector<8x256xf32>, vector<8x256xf32> -> vector<8x256xf32>
    %31 = vector.broadcast %3 : vector<8x1xf32> to vector<8x256xf32>
    %32 = arith.addf %30, %31 : vector<8x256xf32>
    %cst_14 = arith.constant dense<0.000000e+00> : vector<8xf32>
    %33 = vector.multi_reduction <add>, %32, %cst_14 [1] : vector<8x256xf32> to vector<8xf32>
    %34 = vector.shape_cast %33 : vector<8xf32> to vector<8x1xf32>
    %c4_i32_15 = arith.constant 4 : i32
    %35 = tpu.dynamic_rotate %34 by %c4_i32_15 dim 0 : vector<8x1xf32>, i32 -> vector<8x1xf32>
    %36 = arith.addf %34, %35 : vector<8x1xf32>
    %cst_16 = arith.constant 0.001953125 : f32
    %37 = vector.broadcast %cst_16 : f32 to vector<8x1xf32>
    %38 = arith.mulf %36, %37 : vector<8x1xf32>
    %39 = vector.broadcast %38 : vector<8x1xf32> to vector<8x256xf32>
    %40 = arith.subf %32, %39 : vector<8x256xf32>
    %41 = arith.mulf %40, %40 : vector<8x256xf32>
    %cst_17 = arith.constant dense<0.000000e+00> : vector<8xf32>
    %42 = vector.multi_reduction <add>, %41, %cst_17 [1] : vector<8x256xf32> to vector<8xf32>
    %43 = vector.shape_cast %42 : vector<8xf32> to vector<8x1xf32>
    %c4_i32_18 = arith.constant 4 : i32
    %44 = tpu.dynamic_rotate %43 by %c4_i32_18 dim 0 : vector<8x1xf32>, i32 -> vector<8x1xf32>
    %45 = arith.addf %43, %44 : vector<8x1xf32>
    %cst_19 = arith.constant 0.001953125 : f32
    %46 = vector.broadcast %cst_19 : f32 to vector<8x1xf32>
    %47 = arith.mulf %45, %46 : vector<8x1xf32>
    %cst_20 = arith.constant 9.99999974E-6 : f32
    %48 = vector.broadcast %cst_20 : f32 to vector<8x1xf32>
    %49 = arith.addf %47, %48 : vector<8x1xf32>
    %50 = math.rsqrt %49 : vector<8x1xf32>
    %51 = arith.mulf %1, %50 : vector<8x1xf32>
    %52 = vector.broadcast %51 : vector<8x1xf32> to vector<8x256xf32>
    %53 = arith.mulf %40, %52 : vector<8x256xf32>
    %54 = vector.broadcast %2 : vector<8x1xf32> to vector<8x256xf32>
    %55 = arith.addf %53, %54 : vector<8x256xf32>
    %cst_21 = arith.constant 0.000000e+00 : f32
    %56 = vector.broadcast %cst_21 : f32 to vector<8x256xf32>
    %57 = arith.maximumf %55, %56 : vector<8x256xf32>
    %cst_22 = arith.constant dense<0.000000e+00> : vector<8x256xf32>
    %58 = tpu.matmul %4, %57, %cst_22 {dimension_numbers = #tpu.dot_dimension_numbers<[1], [0], [0], [1], [0, 0, 1, 1], [], []>} : vector<8x8xf32>, vector<8x256xf32>, vector<8x256xf32> -> vector<8x256xf32>
    %59 = vector.broadcast %3 : vector<8x1xf32> to vector<8x256xf32>
    %60 = arith.addf %58, %59 : vector<8x256xf32>
    %cst_23 = arith.constant dense<0.000000e+00> : vector<8xf32>
    %61 = vector.multi_reduction <add>, %60, %cst_23 [1] : vector<8x256xf32> to vector<8xf32>
    %62 = vector.shape_cast %61 : vector<8xf32> to vector<8x1xf32>
    %c4_i32_24 = arith.constant 4 : i32
    %63 = tpu.dynamic_rotate %62 by %c4_i32_24 dim 0 : vector<8x1xf32>, i32 -> vector<8x1xf32>
    %64 = arith.addf %62, %63 : vector<8x1xf32>
    %cst_25 = arith.constant 0.001953125 : f32
    %65 = vector.broadcast %cst_25 : f32 to vector<8x1xf32>
    %66 = arith.mulf %64, %65 : vector<8x1xf32>
    %67 = vector.broadcast %66 : vector<8x1xf32> to vector<8x256xf32>
    %68 = arith.subf %60, %67 : vector<8x256xf32>
    %69 = arith.mulf %68, %68 : vector<8x256xf32>
    %cst_26 = arith.constant dense<0.000000e+00> : vector<8xf32>
    %70 = vector.multi_reduction <add>, %69, %cst_26 [1] : vector<8x256xf32> to vector<8xf32>
    %71 = vector.shape_cast %70 : vector<8xf32> to vector<8x1xf32>
    %c4_i32_27 = arith.constant 4 : i32
    %72 = tpu.dynamic_rotate %71 by %c4_i32_27 dim 0 : vector<8x1xf32>, i32 -> vector<8x1xf32>
    %73 = arith.addf %71, %72 : vector<8x1xf32>
    %cst_28 = arith.constant 0.001953125 : f32
    %74 = vector.broadcast %cst_28 : f32 to vector<8x1xf32>
    %75 = arith.mulf %73, %74 : vector<8x1xf32>
    %cst_29 = arith.constant 9.99999974E-6 : f32
    %76 = vector.broadcast %cst_29 : f32 to vector<8x1xf32>
    %77 = arith.addf %75, %76 : vector<8x1xf32>
    %78 = math.rsqrt %77 : vector<8x1xf32>
    %79 = arith.mulf %1, %78 : vector<8x1xf32>
    %80 = vector.broadcast %79 : vector<8x1xf32> to vector<8x256xf32>
    %81 = arith.mulf %68, %80 : vector<8x256xf32>
    %82 = vector.broadcast %2 : vector<8x1xf32> to vector<8x256xf32>
    %83 = arith.addf %81, %82 : vector<8x256xf32>
    %cst_30 = arith.constant 0.000000e+00 : f32
    %84 = vector.broadcast %cst_30 : f32 to vector<8x256xf32>
    %85 = arith.maximumf %83, %84 : vector<8x256xf32>
    %cst_31 = arith.constant dense<0.000000e+00> : vector<8x256xf32>
    %86 = tpu.matmul %4, %85, %cst_31 {dimension_numbers = #tpu.dot_dimension_numbers<[1], [0], [0], [1], [0, 0, 1, 1], [], []>} : vector<8x8xf32>, vector<8x256xf32>, vector<8x256xf32> -> vector<8x256xf32>
    %87 = vector.broadcast %3 : vector<8x1xf32> to vector<8x256xf32>
    %88 = arith.addf %86, %87 : vector<8x256xf32>
    %89 = arith.addf %88, %0 : vector<8x256xf32>
    %c0_32 = arith.constant 0 : index
    %c0_33 = arith.constant 0 : index
    %90 = vector.load %arg3[%c0_32, %c0_33] : memref<256x384xf32, #tpu.memory_space<vmem>>, vector<256x384xf32>
    %cst_34 = arith.constant dense<0.000000e+00> : vector<8x384xf32>
    %91 = tpu.matmul %89, %90, %cst_34 {dimension_numbers = #tpu.dot_dimension_numbers<[1], [0], [0], [1], [0, 0, 1, 1], [], []>} : vector<8x256xf32>, vector<256x384xf32>, vector<8x384xf32> -> vector<8x384xf32>
    %c0_35 = arith.constant 0 : index
    %c0_36 = arith.constant 0 : index
    %92 = vector.load %arg4[%c0_35, %c0_36] : memref<8x384xf32, #tpu.memory_space<vmem>>, vector<8x384xf32>
    tpu.vector_store %arg4[%c0_35, %c0_36], %91 {strides = array<i32>} : memref<8x384xf32, #tpu.memory_space<vmem>>, vector<8x384xf32>,
    return
  }
}

</mosaic_0001>

<bundles_post_ra>
// kernel: tpu_custom_call.1
= control target key start
LH: loop header
LB: loop body
LE: loop exit
PB: predicated region body
PF: predicated region fallthrough
CT: control target
= control target key end

     0   :  { %9 = vsyncpa [#allocation3], 0  ;;  %s861_s0 = inlined_call_operand.hbm [shape: f32[8,256], index: 0, kind: input, shape index: {}]   ;;  %s862_s1 = inlined_call_operand.vmem [shape: f32[8,3], index: 1, kind: input, shape index: {}]   ;;  %s863_s2 = inlined_call_operand.vmem [shape: f32[8,8], index: 2, kind: input, shape index: {}]   ;;  %s864_s3 = inlined_call_operand.hbm [shape: f32[256,384], index: 3, kind: input, shape index: {}]   ;;  %s865_s4 = inlined_call_operand.hbm [shape: f32[8,384], index: 4, kind: output, shape index: {}]  }
   0x1   :  { %10 = vsyncpa [#allocation6], 0 }
   0x2   :  { %11 = vsyncpa [#allocation4], 0  ;;  %s761_s15 = smov [#allocation2]   ;;  %s762_s17 = smov [#allocation5]  }
   0x3   :  { %s18_s16 = sshll.u32 %s761_s15, 4  ;;  %s31_s18 = sshll.u32 %s762_s17, 4  ;;  %s19_s16 = int_to_ptr.vmem [resolvable:$true] %s18_s16  ;;  %s32_s18 = int_to_ptr.vmem [resolvable:$true] %s31_s18 }
   0x4   :  { %s703_s19 = scalar_lea.vmem %s19_s16, 256  ;;  %p708_p1 = scmp.lt.s32.totalorder %s19_s16, %s19_s16 }
   0x5   :  { %p704_p0 = scmp.ne.s32.totalorder %s19_s16, %s703_s19  ;;  %p709_p2 = scmp.lt.s32.totalorder %s703_s19, %s703_s19 }
   0x7   :  { %p710_p3 = por %p709_p2, %p708_p1 }
   0x9   :  { %p711_p4 = pnand %p710_p3, %p704_p0 }
   0xb   :  { %714 = shalt.err (!%p711_p4)
}
   0xc   :  { %21 = dma.hbm_to_vmem [thread:$0]  %s861_s0, 256, %s19_s16, [#allocation3]  }
   0xd   :  { %s723_s22 = scalar_lea.vmem %s32_s18, 12288  ;;  %p728_p6 = scmp.lt.s32.totalorder %s32_s18, %s32_s18 }
   0xe   :  { %p724_p5 = scmp.ne.s32.totalorder %s32_s18, %s723_s22  ;;  %p729_p7 = scmp.lt.s32.totalorder %s723_s22, %s723_s22 }
  0x10   :  { %p730_p8 = por %p729_p7, %p728_p6 }
  0x12   :  { %p731_p9 = pnand %p730_p8, %p724_p5 }
  0x14   :  { %734 = shalt.err (!%p731_p9)
}
  0x15   :  { %s763_s23 = smov 384   ;;  %s764_s24 = smov 24  }
  0x16   :  { %37 = dma.hbm_to_vmem [thread:$0]  %s864_s3, 12288, %s32_s18, [#allocation6], %s763_s23, %s763_s23, %s764_s24  }
  0x17   :  { %755 = dma.done.wait [#allocation3], 256  }
  0x18   :  { %756 = vsyncadd [#allocation3], 4294967040 }
  0x19   :  { %757 = dma.done.wait [#allocation6], 12288  }
  0x1a   :  { %758 = vsyncadd [#allocation6], 4294955008  ;;  %v801_v0 = vld [vmem:[#allocation2] sm:$0xff]  ;;  %v803_v1 = vld [vmem:[#allocation2 + $0x8] sm:$0xff]  ;;  %v765_v3 = vmov 0   ;;  %v766_v22 = vmov 1  }
  0x1b   :  { %v48_v2 = vadd.f32 %v803_v1, %v801_v0  ;;  %684 = vset.pattern.permute.xlu0 %v765_v3  ;;  %685 = vset.pattern.permute.xlu1 %v765_v3  ;;  %v812_v19 = vld [vmem:[%s862_s1] sm:$0xff]  ;;  %v767_v23 = vmov 0.0   ;;  %v768_v24 = vmov 2   ;;  %vm92_vm0 = vcmask 64512  }
  0x1c   :  { %160 = vmatprep.mubr.f32.mxu0 %v767_v23  ;;  %v824_v33 = vld [vmem:[%s863_s2] sm:$0xff]  ;;  %s769_s2 = smov [#allocation7]  }
  0x1d   :  { %49 = vadd.xlane.f32.xlu0 %v48_v2  ;;  %s627_s28 = sshll.u32 %s769_s2, 4  ;;  %s628_s28 = int_to_ptr.vmem [resolvable:$true] %s627_s28 }
  0x1e   :  { %s735_s29 = scalar_lea.vmem %s628_s28, 384  ;;  %p740_p11 = scmp.lt.s32.totalorder %s628_s28, %s628_s28 }
  0x1f   :  { %p736_p10 = scmp.ne.s32.totalorder %s628_s28, %s735_s29  ;;  %p741_p12 = scmp.lt.s32.totalorder %s735_s29, %s735_s29 }
  0x21   :  { %p742_p13 = por %p741_p12, %p740_p11 }
  0x23   :  { %p743_p0 = pnand %p742_p13, %p736_p10 }
  0xa6   :  { %v50_v4 = vpop.xlane.xlu0 %49 }
  0xa7   :  { %v51_v5 = vrot.slane %v50_v4, 4 }
  0xa9   :  { %v52_v6 = vadd.f32 %v51_v5, %v50_v4 }
  0xab   :  { %v53_v7 = vmul.f32 0.001953125, %v52_v6 }
  0xad   :  { %56 = vperm.xlu0 %684, %v53_v7  }
 0x128   :  { %v57_v8 = vpop.permute.xlu0 %56 }
 0x129   :  { %v59_v9 = vsub.f32 %v801_v0, %v57_v8  ;;  %v60_v10 = vsub.f32 %v803_v1, %v57_v8 }
 0x12b   :  { %v61_v11 = vmul.f32 %v59_v9, %v59_v9  ;;  %v62_v12 = vmul.f32 %v60_v10, %v60_v10 }
 0x12d   :  { %v63_v13 = vadd.f32 %v62_v12, %v61_v11 }
 0x12f   :  { %64 = vadd.xlane.f32.xlu1 %v63_v13 }
 0x1b8   :  { %v65_v14 = vpop.xlane.xlu1 %64 }
 0x1b9   :  { %v66_v15 = vrot.slane %v65_v14, 4 }
 0x1bb   :  { %v67_v16 = vadd.f32 %v66_v15, %v65_v14 }
 0x1bd   :  { %v68_v17 = vmul.f32 0.001953125, %v67_v16 }
 0x1bf   :  { %v69_v18 = vadd.f32 1e-05, %v68_v17 }
 0x1c1   :  { %689 = vrsqrt.f32 %v69_v18 }
 0x1ce   :  { %v690_v20 = vpop.eup %689 }
 0x1cf   :  { %v71_v21 = vmul.f32 %v690_v20, %v812_v19 }
 0x1d1   :  { %74 = vperm.xlu1 %685, %v71_v21  }
 0x1d5   :  { %686 = vset.pattern.permute.xlu1 %v766_v22 }
 0x1d6   :  { %81 = vperm.xlu1 %686, %v812_v19  }
 0x1da   :  { %687 = vset.pattern.permute.xlu1 %v768_v24 }
 0x1db   :  { %89 = vperm.xlu1 %687, %v812_v19  }
 0x1df   :  { %688 = vset.pattern.permute.xlu1 %v765_v3 }
 0x24c   :  { %v75_v25 = vpop.permute.xlu1 %74 }
 0x24d   :  { %v77_v26 = vmul.f32 %v75_v25, %v59_v9  ;;  %v78_v27 = vmul.f32 %v75_v25, %v60_v10  ;;  %v427_v25 = vld [vmem:[#allocation5 + $0x170] sm:$0xff] }
 0x24e   :  { %477 = vmatprep.subr.mxu1 %v427_v25 }
 0x251   :  { %v817_v28 = vpop.permute.xlu1 %81 }
 0x252   :  { %v85_v29 = vadd.f32 %v817_v28, %v78_v27  ;;  %v84_v30 = vadd.f32 %v817_v28, %v77_v26  ;;  %v426_v26 = vld [vmem:[#allocation5 + $0x168] sm:$0xff]  ;;  %v424_v27 = vld [vmem:[#allocation5 + $0x158] sm:$0xff] }
 0x253   :  { %478 = vmatpush1.msra.mxu1 %v426_v26 }
 0x254   :  { %v87_v31 = vmax.f32 %v85_v29, 0.0  ;;  %v86_v32 = vmax.f32 %v84_v30, 0.0  ;;  %v423_v29 = vld [vmem:[#allocation5 + $0x150] sm:$0xff]  ;;  %v421_v30 = vld [vmem:[#allocation5 + $0x140] sm:$0xff]  ;;  %479 = vmatprep.subr.mxu1 %v424_v27 }
 0x255   :  { %480 = vmatpush1.msra.mxu1 %v423_v29 }
 0x256   :  { %126 = vmatprep.subr.mxu0 %v87_v31  ;;  %v828_v35 = vpop.permute.xlu1 %89  ;;  %v420_v31 = vld [vmem:[#allocation5 + $0x138] sm:$0xff]  ;;  %481 = vmatprep.subr.mxu1 %v421_v30 }
 0x257   :  { %127 = vmatpush1.msra.mxu0 %v86_v32  ;;  %v418_v32 = vld [vmem:[#allocation5 + $0x128] sm:$0xff]  ;;  %482 = vmatpush1.msra.mxu1 %v420_v31 }
 0x258   :  { %637 = vmatmul.mubr.msk.f32.vlgmr.msra.gmra.mxu0 %vm92_vm0, %v824_v33  ;;  %483 = vmatprep.subr.mxu1 %v418_v32  ;;  %v476_v32 = vld [vmem:[#allocation5 + $0x2f8] sm:$0xff] }
 0x259   :  { %266 = vmatprep.mubr.f32.mxu0 %v767_v23 }
 0x318   :  { %v162_v34 = vpop.f32.mrf.mxu0 }
 0x319   :  { %v163_v38 = vadd.f32 %v162_v34, %v828_v35  ;;  %v417_v34 = vld [vmem:[#allocation5 + $0x120] sm:$0xff] }
 0x31a   :  { %v164_v36 = vpop.f32.mrf.mxu0  ;;  %484 = vmatpush1.msra.mxu1 %v417_v34  ;;  %v428_v34 = vld [vmem:[#allocation5 + $0x178] sm:$0xff] }
 0x31b   :  { %v165_v37 = vadd.f32 %v164_v36, %v828_v35  ;;  %v415_v36 = vld [vmem:[#allocation5 + $0x110] sm:$0xff] }
 0x31c   :  { %485 = vmatprep.subr.mxu1 %v415_v36  ;;  %v473_v36 = vld [vmem:[#allocation5 + $0x2e0] sm:$0xff] }
 0x31d   :  { %v167_v39 = vadd.f32 %v165_v37, %v163_v38 }
 0x31f   :  { %168 = vadd.xlane.f32.xlu1 %v167_v39  ;;  %v409_v39 = vld [vmem:[#allocation5 + $0xe0] sm:$0xff] }
 0x3a8   :  { %v169_v40 = vpop.xlane.xlu1 %168 }
 0x3a9   :  { %v170_v41 = vrot.slane %v169_v40, 4 }
 0x3ab   :  { %v171_v42 = vadd.f32 %v170_v41, %v169_v40  ;;  %v408_v40 = vld [vmem:[#allocation5 + $0xd8] sm:$0xff]  ;;  %v406_v41 = vld [vmem:[#allocation5 + $0xc8] sm:$0xff] }
 0x3ad   :  { %v172_v43 = vmul.f32 0.001953125, %v171_v42  ;;  %v405_v42 = vld [vmem:[#allocation5 + $0xc0] sm:$0xff] }
 0x3af   :  { %175 = vperm.xlu0 %684, %v172_v43   ;;  %v403_v43 = vld [vmem:[#allocation5 + $0xb0] sm:$0xff] }
 0x42a   :  { %v176_v44 = vpop.permute.xlu0 %175 }
 0x42b   :  { %v178_v45 = vsub.f32 %v163_v38, %v176_v44  ;;  %v179_v46 = vsub.f32 %v165_v37, %v176_v44  ;;  %v414_v37 = vld [vmem:[#allocation5 + $0x108] sm:$0xff]  ;;  %v411_v38 = vld [vmem:[#allocation5 + $0xf0] sm:$0xff] }
 0x42c   :  { %486 = vmatpush1.msra.mxu1 %v414_v37  ;;  %v402_v44 = vld [vmem:[#allocation5 + $0xa8] sm:$0xff]  ;;  %v425_v37 = vld [vmem:[#allocation5 + $0x160] sm:$0xff] }
 0x42d   :  { %v180_v47 = vmul.f32 %v178_v45, %v178_v45  ;;  %v181_v48 = vmul.f32 %v179_v46, %v179_v46 }
 0x42f   :  { %v182_v49 = vadd.f32 %v181_v48, %v180_v47  ;;  %v397_v47 = vld [vmem:[#allocation5 + $0x80] sm:$0xff]  ;;  %v396_v48 = vld [vmem:[#allocation5 + $0x78] sm:$0xff] }
 0x431   :  { %183 = vadd.xlane.f32.xlu0 %v182_v49  ;;  %v394_v49 = vld [vmem:[#allocation5 + $0x68] sm:$0xff] }
 0x4ba   :  { %v184_v50 = vpop.xlane.xlu0 %183 }
 0x4bb   :  { %v185_v51 = vrot.slane %v184_v50, 4 }
 0x4bd   :  { %v186_v52 = vadd.f32 %v185_v51, %v184_v50  ;;  %v393_v50 = vld [vmem:[#allocation5 + $0x60] sm:$0xff]  ;;  %v391_v51 = vld [vmem:[#allocation5 + $0x50] sm:$0xff] }
 0x4bf   :  { %v187_v53 = vmul.f32 0.001953125, %v186_v52  ;;  %v390_v52 = vld [vmem:[#allocation5 + $0x48] sm:$0xff] }
 0x4c1   :  { %v188_v54 = vadd.f32 1e-05, %v187_v53  ;;  %v388_v53 = vld [vmem:[#allocation5 + $0x38] sm:$0xff] }
 0x4c3   :  { %691 = vrsqrt.f32 %v188_v54  ;;  %v387_v54 = vld [vmem:[#allocation5 + $0x30] sm:$0xff] }
 0x4d0   :  { %v692_v55 = vpop.eup %691 }
 0x4d1   :  { %v190_v56 = vmul.f32 %v692_v55, %v812_v19  ;;  %v385_v55 = vld [vmem:[#allocation5 + $0x20] sm:$0xff] }
 0x4d3   :  { %193 = vperm.xlu1 %688, %v190_v56   ;;  %v384_v56 = vld [vmem:[#allocation5 + $0x18] sm:$0xff] }
 0x54e   :  { %v194_v57 = vpop.permute.xlu1 %193 }
 0x54f   :  { %v196_v58 = vmul.f32 %v194_v57, %v178_v45  ;;  %v197_v59 = vmul.f32 %v194_v57, %v179_v46  ;;  %v400_v45 = vld [vmem:[#allocation5 + $0x98] sm:$0xff]  ;;  %v399_v46 = vld [vmem:[#allocation5 + $0x90] sm:$0xff]  ;;  %v382_v57 = vld [vmem:[#allocation5 + $0x8] sm:$0xff] }
 0x551   :  { %v198_v60 = vadd.f32 %v196_v58, %v817_v28  ;;  %v199_v61 = vadd.f32 %v197_v59, %v817_v28  ;;  %v381_v58 = vld [vmem:[#allocation5] sm:$0xff]  ;;  %v475_v59 = vld [vmem:[#allocation5 + $0x2f0] sm:$0xff] }
 0x553   :  { %v200_v62 = vmax.f32 %v198_v60, 0.0  ;;  %v201_v63 = vmax.f32 %v199_v61, 0.0  ;;  %v474_v60 = vld [vmem:[#allocation5 + $0x2e8] sm:$0xff]  ;;  %v472_v61 = vld [vmem:[#allocation5 + $0x2d8] sm:$0xff] }
 0x555   :  { %232 = vmatprep.subr.mxu0 %v201_v63  ;;  %v469_v63 = vld [vmem:[#allocation5 + $0x2c0] sm:$0xff] }
 0x556   :  { %233 = vmatpush1.msra.mxu0 %v200_v62  ;;  %v471_v62 = vld [vmem:[#allocation5 + $0x2d0] sm:$0xff] }
 0x557   :  { %638 = vmatmul.mubr.msk.f32.vlgmr.msra.gmra.mxu0 %vm92_vm0, %v824_v33 }
 0x558   :  { %372 = vmatprep.mubr.f32.mxu0 %v767_v23 }
 0x617   :  { %v268_v2 = vpop.f32.mrf.mxu0 }
 0x618   :  { %v269_v4 = vadd.f32 %v268_v2, %v828_v35  ;;  %v468_v2 = vld [vmem:[#allocation5 + $0x2b8] sm:$0xff] }
 0x619   :  { %v270_v3 = vpop.f32.mrf.mxu0 }
 0x61a   :  { %v271_v5 = vadd.f32 %v270_v3, %v828_v35  ;;  %v466_v3 = vld [vmem:[#allocation5 + $0x2a8] sm:$0xff] }
 0x61c   :  { %v273_v6 = vadd.f32 %v271_v5, %v269_v4 }
 0x61e   :  { %274 = vadd.xlane.f32.xlu1 %v273_v6  ;;  %v462_v6 = vld [vmem:[#allocation5 + $0x288] sm:$0xff] }
 0x6a7   :  { %v275_v7 = vpop.xlane.xlu1 %274 }
 0x6a8   :  { %v276_v8 = vrot.slane %v275_v7, 4 }
 0x6aa   :  { %v277_v9 = vadd.f32 %v276_v8, %v275_v7  ;;  %v460_v7 = vld [vmem:[#allocation5 + $0x278] sm:$0xff]  ;;  %v459_v8 = vld [vmem:[#allocation5 + $0x270] sm:$0xff] }
 0x6ac   :  { %v278_v10 = vmul.f32 0.001953125, %v277_v9  ;;  %v457_v9 = vld [vmem:[#allocation5 + $0x260] sm:$0xff] }
 0x6ae   :  { %281 = vperm.xlu0 %684, %v278_v10   ;;  %v456_v10 = vld [vmem:[#allocation5 + $0x258] sm:$0xff] }
 0x729   :  { %v282_v11 = vpop.permute.xlu0 %281 }
 0x72a   :  { %v839_v12 = vsub.f32 %v269_v4, %v282_v11  ;;  %v841_v13 = vsub.f32 %v271_v5, %v282_v11  ;;  %v465_v4 = vld [vmem:[#allocation5 + $0x2a0] sm:$0xff]  ;;  %v463_v5 = vld [vmem:[#allocation5 + $0x290] sm:$0xff]  ;;  %v454_v11 = vld [vmem:[#allocation5 + $0x248] sm:$0xff] }
 0x72c   :  { %v286_v14 = vmul.f32 %v839_v12, %v839_v12  ;;  %v287_v15 = vmul.f32 %v841_v13, %v841_v13 }
 0x72e   :  { %v288_v16 = vadd.f32 %v287_v15, %v286_v14  ;;  %v453_v14 = vld [vmem:[#allocation5 + $0x240] sm:$0xff]  ;;  %v451_v15 = vld [vmem:[#allocation5 + $0x230] sm:$0xff] }
 0x730   :  { %289 = vadd.xlane.f32.xlu0 %v288_v16  ;;  %v450_v16 = vld [vmem:[#allocation5 + $0x228] sm:$0xff] }
 0x7b9   :  { %v290_v17 = vpop.xlane.xlu0 %289 }
 0x7ba   :  { %v291_v18 = vrot.slane %v290_v17, 4 }
 0x7bc   :  { %v292_v20 = vadd.f32 %v291_v18, %v290_v17  ;;  %v448_v17 = vld [vmem:[#allocation5 + $0x218] sm:$0xff]  ;;  %v447_v18 = vld [vmem:[#allocation5 + $0x210] sm:$0xff] }
 0x7be   :  { %v293_v21 = vmul.f32 0.001953125, %v292_v20  ;;  %v445_v20 = vld [vmem:[#allocation5 + $0x200] sm:$0xff] }
 0x7c0   :  { %v294_v22 = vadd.f32 1e-05, %v293_v21  ;;  %v444_v21 = vld [vmem:[#allocation5 + $0x1f8] sm:$0xff] }
 0x7c2   :  { %693 = vrsqrt.f32 %v294_v22  ;;  %v442_v22 = vld [vmem:[#allocation5 + $0x1e8] sm:$0xff] }
 0x7cf   :  { %v694_v23 = vpop.eup %693 }
 0x7d0   :  { %v296_v24 = vmul.f32 %v694_v23, %v812_v19  ;;  %v412_v19 = vld [vmem:[#allocation5 + $0xf8] sm:$0xff]  ;;  %v441_v23 = vld [vmem:[#allocation5 + $0x1e0] sm:$0xff] }
 0x7d1   :  { %487 = vmatprep.subr.mxu1 %v412_v19  ;;  %v467_v19 = vld [vmem:[#allocation5 + $0x2b0] sm:$0xff] }
 0x7d2   :  { %299 = vperm.xlu1 %688, %v296_v24   ;;  %488 = vmatpush1.msra.mxu1 %v411_v38  ;;  %v464_v38 = vld [vmem:[#allocation5 + $0x298] sm:$0xff] }
 0x7d3   :  { %489 = vmatprep.subr.mxu1 %v409_v39  ;;  %v416_v39 = vld [vmem:[#allocation5 + $0x118] sm:$0xff] }
 0x7d4   :  { %490 = vmatpush1.msra.mxu1 %v408_v40  ;;  %v461_v40 = vld [vmem:[#allocation5 + $0x280] sm:$0xff] }
 0x7d5   :  { %491 = vmatprep.subr.mxu1 %v406_v41  ;;  %v413_v41 = vld [vmem:[#allocation5 + $0x100] sm:$0xff] }
 0x7d6   :  { %492 = vmatpush1.msra.mxu1 %v405_v42  ;;  %v410_v42 = vld [vmem:[#allocation5 + $0xe8] sm:$0xff] }
 0x7d7   :  { %493 = vmatprep.subr.mxu1 %v403_v43  ;;  %v455_v43 = vld [vmem:[#allocation5 + $0x250] sm:$0xff] }
 0x7d8   :  { %494 = vmatpush1.msra.mxu1 %v402_v44  ;;  %v407_v44 = vld [vmem:[#allocation5 + $0xd0] sm:$0xff] }
 0x7d9   :  { %495 = vmatprep.subr.mxu1 %v400_v45  ;;  %v452_v45 = vld [vmem:[#allocation5 + $0x238] sm:$0xff] }
 0x7da   :  { %496 = vmatpush1.msra.mxu1 %v399_v46  ;;  %v404_v46 = vld [vmem:[#allocation5 + $0xb8] sm:$0xff] }
 0x7db   :  { %497 = vmatprep.subr.mxu1 %v397_v47  ;;  %v449_v47 = vld [vmem:[#allocation5 + $0x220] sm:$0xff] }
 0x7dc   :  { %498 = vmatpush1.msra.mxu1 %v396_v48  ;;  %v401_v48 = vld [vmem:[#allocation5 + $0xa0] sm:$0xff] }
 0x7dd   :  { %499 = vmatprep.subr.mxu1 %v394_v49  ;;  %v446_v49 = vld [vmem:[#allocation5 + $0x208] sm:$0xff] }
 0x7de   :  { %500 = vmatpush1.msra.mxu1 %v393_v50  ;;  %v398_v50 = vld [vmem:[#allocation5 + $0x88] sm:$0xff] }
 0x7df   :  { %501 = vmatprep.subr.mxu1 %v391_v51  ;;  %v443_v51 = vld [vmem:[#allocation5 + $0x1f0] sm:$0xff] }
 0x7e0   :  { %502 = vmatpush1.msra.mxu1 %v390_v52  ;;  %v395_v52 = vld [vmem:[#allocation5 + $0x70] sm:$0xff] }
 0x7e1   :  { %503 = vmatprep.subr.mxu1 %v388_v53  ;;  %v439_v53 = vld [vmem:[#allocation5 + $0x1d0] sm:$0xff] }
 0x7e2   :  { %504 = vmatpush1.msra.mxu1 %v387_v54  ;;  %v440_v54 = vld [vmem:[#allocation5 + $0x1d8] sm:$0xff] }
 0x7e3   :  { %505 = vmatprep.subr.mxu1 %v385_v55  ;;  %v438_v55 = vld [vmem:[#allocation5 + $0x1c8] sm:$0xff] }
 0x7e4   :  { %506 = vmatpush1.msra.mxu1 %v384_v56  ;;  %v392_v56 = vld [vmem:[#allocation5 + $0x58] sm:$0xff] }
 0x7e5   :  { %507 = vmatprep.subr.mxu1 %v382_v57  ;;  %v436_v57 = vld [vmem:[#allocation5 + $0x1b8] sm:$0xff] }
 0x7e6   :  { %508 = vmatpush1.msra.mxu1 %v381_v58  ;;  %v437_v58 = vld [vmem:[#allocation5 + $0x1c0] sm:$0xff] }
 0x7e7   :  { %509 = vmatprep.subr.mxu1 %v475_v59  ;;  %v435_v59 = vld [vmem:[#allocation5 + $0x1b0] sm:$0xff] }
 0x7e8   :  { %510 = vmatpush2.msra.mxu1 %v474_v60  ;;  %v389_v60 = vld [vmem:[#allocation5 + $0x40] sm:$0xff] }
 0x7e9   :  { %511 = vmatprep.subr.mxu1 %v472_v61  ;;  %v433_v61 = vld [vmem:[#allocation5 + $0x1a0] sm:$0xff] }
 0x7ea   :  { %512 = vmatpush2.msra.mxu1 %v471_v62  ;;  %v434_v62 = vld [vmem:[#allocation5 + $0x1a8] sm:$0xff] }
 0x7eb   :  { %513 = vmatprep.subr.mxu1 %v469_v63  ;;  %v432_v63 = vld [vmem:[#allocation5 + $0x198] sm:$0xff] }
 0x7ec   :  { %514 = vmatpush2.msra.mxu1 %v468_v2  ;;  %v386_v2 = vld [vmem:[#allocation5 + $0x28] sm:$0xff] }
 0x7ed   :  { %515 = vmatprep.subr.mxu1 %v466_v3  ;;  %v430_v3 = vld [vmem:[#allocation5 + $0x188] sm:$0xff] }
 0x7ee   :  { %516 = vmatpush2.msra.mxu1 %v465_v4  ;;  %v431_v4 = vld [vmem:[#allocation5 + $0x190] sm:$0xff] }
 0x7ef   :  { %517 = vmatprep.subr.mxu1 %v463_v5  ;;  %v429_v5 = vld [vmem:[#allocation5 + $0x180] sm:$0xff] }
 0x7f0   :  { %518 = vmatpush2.msra.mxu1 %v462_v6  ;;  %v383_v6 = vld [vmem:[#allocation5 + $0x10] sm:$0xff] }
 0x7f1   :  { %519 = vmatprep.subr.mxu1 %v460_v7 }
 0x7f2   :  { %520 = vmatpush2.msra.mxu1 %v459_v8 }
 0x7f3   :  { %521 = vmatprep.subr.mxu1 %v457_v9 }
 0x7f4   :  { %522 = vmatpush2.msra.mxu1 %v456_v10 }
 0x7f5   :  { %523 = vmatprep.subr.mxu1 %v454_v11 }
 0x7f6   :  { %524 = vmatpush2.msra.mxu1 %v453_v14 }
 0x7f7   :  { %525 = vmatprep.subr.mxu1 %v451_v15 }
 0x7f8   :  { %526 = vmatpush2.msra.mxu1 %v450_v16 }
 0x7f9   :  { %527 = vmatprep.subr.mxu1 %v448_v17 }
 0x7fa   :  { %528 = vmatpush2.msra.mxu1 %v447_v18 }
 0x7fb   :  { %529 = vmatprep.subr.mxu1 %v445_v20 }
 0x7fc   :  { %530 = vmatpush2.msra.mxu1 %v444_v21 }
 0x7fd   :  { %531 = vmatprep.subr.mxu1 %v442_v22 }
 0x7fe   :  { %532 = vmatpush2.msra.mxu1 %v441_v23 }
 0x7ff   :  { %533 = vmatprep.subr.mxu1 %v439_v53 }
 0x800   :  { %534 = vmatpush2.msra.mxu1 %v438_v55 }
 0x801   :  { %535 = vmatprep.subr.mxu1 %v436_v57 }
 0x802   :  { %536 = vmatpush2.msra.mxu1 %v435_v59 }
 0x803   :  { %537 = vmatprep.subr.mxu1 %v433_v61 }
 0x804   :  { %538 = vmatpush2.msra.mxu1 %v432_v63 }
 0x805   :  { %539 = vmatprep.subr.mxu1 %v430_v3 }
 0x806   :  { %540 = vmatpush2.msra.mxu1 %v429_v5 }
 0x84d   :  { %v300_v24 = vpop.permute.xlu1 %299 }
 0x84e   :  { %v302_v25 = vmul.f32 %v300_v24, %v839_v12  ;;  %v303_v26 = vmul.f32 %v300_v24, %v841_v13  ;;  %v470_v12 = vld [vmem:[#allocation5 + $0x2c8] sm:$0xff] }
 0x84f   :  { %v422_v13 = vld [vmem:[#allocation5 + $0x148] sm:$0xff] }
 0x850   :  { %v304_v27 = vadd.f32 %v302_v25, %v817_v28  ;;  %v305_v29 = vadd.f32 %v303_v26, %v817_v28  ;;  %v419_v28 = vld [vmem:[#allocation5 + $0x130] sm:$0xff] }
 0x852   :  { %v306_v30 = vmax.f32 %v304_v27, 0.0  ;;  %v307_v31 = vmax.f32 %v305_v29, 0.0 }
 0x854   :  { %338 = vmatprep.subr.mxu0 %v307_v31 }
 0x855   :  { %339 = vmatpush1.msra.mxu0 %v306_v30 }
 0x856   :  { %639 = vmatmul.mubr.msk.f32.vlgmr.msra.gmra.mxu0 %vm92_vm0, %v824_v33  ;;  %640 = vmatprep.subr.mxu0 %v476_v32  ;;  %v458_v33 = vld [vmem:[#allocation5 + $0x268] sm:$0xff] }
 0x857   :  { %641 = vmatpush3.msra.mxu0 %v428_v34 }
 0x858   :  { %642 = vmatprep.subr.mxu0 %v473_v36 }
 0x859   :  { %643 = vmatpush3.msra.mxu0 %v425_v37 }
 0x85a   :  { %644 = vmatprep.subr.mxu0 %v470_v12 }
 0x85b   :  { %645 = vmatpush3.msra.mxu0 %v422_v13 }
 0x85c   :  { %646 = vmatprep.subr.mxu0 %v467_v19 }
 0x85d   :  { %647 = vmatpush3.msra.mxu0 %v419_v28 }
 0x85e   :  { %648 = vmatprep.subr.mxu0 %v464_v38 }
 0x85f   :  { %649 = vmatpush3.msra.mxu0 %v416_v39 }
 0x860   :  { %650 = vmatprep.subr.mxu0 %v461_v40 }
 0x861   :  { %651 = vmatpush3.msra.mxu0 %v413_v41 }
 0x862   :  { %652 = vmatprep.subr.mxu0 %v458_v33 }
 0x863   :  { %653 = vmatpush3.msra.mxu0 %v410_v42 }
 0x864   :  { %654 = vmatprep.subr.mxu0 %v455_v43 }
 0x865   :  { %655 = vmatpush3.msra.mxu0 %v407_v44 }
 0x866   :  { %656 = vmatprep.subr.mxu0 %v452_v45 }
 0x867   :  { %657 = vmatpush3.msra.mxu0 %v404_v46 }
 0x868   :  { %658 = vmatprep.subr.mxu0 %v449_v47 }
 0x869   :  { %659 = vmatpush3.msra.mxu0 %v401_v48 }
 0x86a   :  { %660 = vmatprep.subr.mxu0 %v446_v49 }
 0x86b   :  { %661 = vmatpush3.msra.mxu0 %v398_v50 }
 0x86c   :  { %662 = vmatprep.subr.mxu0 %v443_v51 }
 0x86d   :  { %663 = vmatpush3.msra.mxu0 %v395_v52 }
 0x86e   :  { %664 = vmatprep.subr.mxu0 %v440_v54 }
 0x86f   :  { %665 = vmatpush3.msra.mxu0 %v392_v56 }
 0x870   :  { %666 = vmatprep.subr.mxu0 %v437_v58 }
 0x871   :  { %667 = vmatpush3.msra.mxu0 %v389_v60 }
 0x872   :  { %668 = vmatprep.subr.mxu0 %v434_v62 }
 0x873   :  { %669 = vmatpush3.msra.mxu0 %v386_v2 }
 0x874   :  { %670 = vmatprep.subr.mxu0 %v431_v4 }
 0x875   :  { %671 = vmatpush3.msra.mxu0 %v383_v6 }
 0x916   :  { %v374_v7 = vpop.f32.mrf.mxu0 }
 0x917   :  { %v375_v8 = vadd.f32 %v374_v7, %v828_v35 }
 0x918   :  { %v376_v9 = vpop.f32.mrf.mxu0 }
 0x919   :  { %v377_v10 = vadd.f32 %v376_v9, %v828_v35  ;;  %v379_v14 = vadd.f32 %v375_v8, %v801_v0 }
 0x91b   :  { %v380_v11 = vadd.f32 %v377_v10, %v803_v1 }
 0x91d   :  { %541 = vmatprep.mubr.f32.mxu1 %v380_v11  ;;  %612 = vmatprep.mubr.f32.mxu0 %v380_v11 }
 0x91e   :  { %542 = vmatmul.mubr.f32.vlgmr.msra.gmra.mxu1 %v379_v14  ;;  %613 = vmatmul.mubr.f32.vlgmr.msra.gmra.mxu0 %v379_v14 }
 0x9de   :  { %v543_v15 = vpop.f32.mrf.mxu1  ;;  %v672_v16 = vpop.f32.mrf.mxu0 }
 0x9df   :  { %618 = vst [vmem:[#allocation7] sm:$0xff] %v543_v15 }
 0x9e0   :  { %v545_v17 = vpop.f32.mrf.mxu1  ;;  %v673_v18 = vpop.f32.mrf.mxu0 }
 0x9e1   :  { %619 = vst [vmem:[#allocation7 + $0x8] sm:$0xff] %v545_v17  ;;  %v674_v20 = vadd.f32 %v673_v18, %v672_v16 }
 0x9e3   :  { %620 = vst [vmem:[#allocation7 + $0x10] sm:$0xff] %v674_v20 }
 0x9e4   :  { %746 = shalt.err (!%p743_p0)
}
 0x9e5   :  { %630 = dma.vmem_to_hbm [thread:$0]  %s628_s28, 384, %s865_s4, [#allocation4]  }
 0x9e6   :  { %759 = dma.done.wait [#allocation4], 384  }
 0x9e7   :  { %760 = vsyncadd [#allocation4], 4294966912 }
 0x9e8   :  { %634 = vsyncpa [#allocation3], 1 }
 0x9e9   :  { %635 = vsyncpa [#allocation6], 1 }
 0x9ea   :  { %636 = vsyncpa [#allocation4], 1 }

</bundles_post_ra>
